<compile_context>
chip_gen: v6e
topology: v6e:2x2x1
jax: 0.10.0
libtpu: 0.0.40
codegen_flags: <defaults>
</compile_context>

<pallas_src>
import functools

import jax
import jax.numpy as jnp
from jax.experimental import pallas as pl
from jax.experimental.pallas import tpu as pltpu

_LANE = 128


def _round_up(x, m):
    return ((x + m - 1) // m) * m


def _sublane(*dtypes):
    """Dtype-native sublane granularity for the narrowest dtype involved."""
    min_item = min(jnp.dtype(d).itemsize for d in dtypes)
    return {4: 8, 2: 16, 1: 32}.get(min_item, 8)


def _vmem_capacity_bytes():
    try:
        return int(pltpu.get_tpu_info().vmem_capacity_bytes)
    except Exception:
        return 64 << 20  # conservative fallback (v7x per-TC VMEM)


def _cls_head_kernel(feat_ref, w1_ref, b1_ref, w2_ref, b2_ref,
                     logits_ref, hidden_ref, *, precision):
    # dropout (eval mode) is identity — no-op here.
    # TODO(synk): training-mode dropout (stochastic masking) not implemented.
    x = feat_ref[...]

    # dense: [TM, D_in] @ [D_in, H] on the MXU, f32 accumulation.
    h = jnp.dot(x, w1_ref[...], preferred_element_type=jnp.float32,
                precision=precision)
    # bias add + tanh in f32 (VPU/EUP slots, hidden under the MXU work).
    h = jnp.tanh(h + b1_ref[...].astype(jnp.float32))

    # Downcast once; reuse for the out_proj matmul and (when dtypes match)
    # the hidden writeback — avoids a second [TM, H] cast per step.
    h_lo = h.astype(w2_ref.dtype)
    if hidden_ref.dtype == w2_ref.dtype:
        hidden_ref[...] = h_lo
    else:
        hidden_ref[...] = h.astype(hidden_ref.dtype)

    # out_proj: [TM, H] @ [H, L_pad], f32 accumulation.
    logits = jnp.dot(h_lo, w2_ref[...], preferred_element_type=jnp.float32,
                     precision=precision)
    logits = logits + b2_ref[...].astype(jnp.float32)
    logits_ref[...] = logits.astype(logits_ref.dtype)


def roberta_classification_head(features, w_dense, b_dense, w_out, b_out,
                                *, block_m=None, param_dtype=None,
                                hidden_dtype=None, precision=None):
    """features: [B, D_in]; w_dense: [D_in, H]; b_dense: [H] or [1, H];
       w_out: [H, L]; b_out: [L] or [1, L].
       Returns (logits [B, L], hidden [B, H])."""
    B, d_in = features.shape
    H = w_dense.shape[1]
    L = w_out.shape[1]
    out_dtype = features.dtype
    hid_dtype = jnp.dtype(hidden_dtype) if hidden_dtype is not None else out_dtype

    # Optional: narrow weights so the MXU runs its native (bf16) path.
    if param_dtype is not None:
        w_dense = w_dense.astype(param_dtype)
        w_out = w_out.astype(param_dtype)

    vmem_cap = _vmem_capacity_bytes()
    if block_m is None:
        # Bigger tiles on 128 MiB parts (v5e/v6e); keep 256 on 64 MiB v7x.
        block_m = 512 if vmem_cap > (96 << 20) else 256

    sub = _sublane(features.dtype, out_dtype, hid_dtype)

    # --- batch tiling: minimize padding; ensure >= 2 grid steps when B>sub ---
    n_tiles = pl.cdiv(B, block_m)
    if B > sub:
        n_tiles = max(n_tiles, 2)
    n_tiles = min(n_tiles, pl.cdiv(B, sub))
    tm = _round_up(pl.cdiv(B, n_tiles), sub)
    n_tiles = pl.cdiv(B, tm)
    b_pad = n_tiles * tm
    if b_pad != B:
        features = jnp.pad(features, ((0, b_pad - B), (0, 0)))

    # --- lane-dense logits: pad num_labels up to a multiple of 128 ---
    l_pad = _round_up(L, _LANE)
    b_dense = b_dense.reshape(1, -1)
    b_out = b_out.reshape(1, -1)
    if l_pad != L:
        w_out = jnp.pad(w_out, ((0, 0), (0, l_pad - L)))
        b_out = jnp.pad(b_out, ((0, 0), (0, l_pad - L)))

    grid = (n_tiles,)

    # --- VMEM budget: resident weights + double-buffered streamed tiles,
    #     capped at ~80% of physical capacity (headroom for Mosaic scratch) ---
    def nbytes(a):
        return a.size * jnp.dtype(a.dtype).itemsize

    resident = nbytes(w_dense) + nbytes(b_dense) + nbytes(w_out) + nbytes(b_out)
    per_step = (tm * d_in * jnp.dtype(features.dtype).itemsize
                + tm * H * jnp.dtype(hid_dtype).itemsize
                + tm * l_pad * jnp.dtype(out_dtype).itemsize)
    want = 2 * resident + 2 * per_step + (8 << 20)
    vmem_bytes = int(min(max(want, 16 << 20), int(vmem_cap * 0.8)))

    # --- cost estimate so XLA can schedule around the custom call ---
    flops = 2 * b_pad * d_in * H + 2 * b_pad * H * l_pad
    bytes_accessed = int(b_pad * d_in * jnp.dtype(features.dtype).itemsize
                         + resident
                         + b_pad * H * jnp.dtype(hid_dtype).itemsize
                         + b_pad * l_pad * jnp.dtype(out_dtype).itemsize)
    cost = pl.CostEstimate(flops=flops, transcendentals=b_pad * H,
                           bytes_accessed=bytes_accessed)

    kernel = functools.partial(_cls_head_kernel, precision=precision)

    def build(single_buffer_residents):
        res_kw = ({"pipeline_mode": pl.Buffered(1)}
                  if single_buffer_residents else {})
        in_specs = [
            pl.BlockSpec((tm, d_in), lambda i: (i, 0)),            # streamed
            pl.BlockSpec((d_in, H), lambda i: (0, 0), **res_kw),   # resident
            pl.BlockSpec((1, H), lambda i: (0, 0), **res_kw),      # resident
            pl.BlockSpec((H, l_pad), lambda i: (0, 0), **res_kw),  # resident
            pl.BlockSpec((1, l_pad), lambda i: (0, 0), **res_kw),  # resident
        ]
        return pl.pallas_call(
            kernel,
            grid=grid,
            in_specs=in_specs,
            out_specs=(
                pl.BlockSpec((tm, l_pad), lambda i: (i, 0)),
                pl.BlockSpec((tm, H), lambda i: (i, 0)),
            ),
            out_shape=(
                jax.ShapeDtypeStruct((b_pad, l_pad), out_dtype),
                jax.ShapeDtypeStruct((b_pad, H), hid_dtype),
            ),
            compiler_params=pltpu.CompilerParams(
                dimension_semantics=("parallel",),
                vmem_limit_bytes=vmem_bytes,
            ),
            cost_estimate=cost,
        )

    args = (features, w_dense, b_dense, w_out, b_out)
    try:
        logits_pad, hidden = build(hasattr(pl, "Buffered"))(*args)
    except Exception:
        # Fallback: default (double) buffering for the resident operands.
        logits_pad, hidden = build(False)(*args)

    return logits_pad[:B, :L], hidden[:B]


if __name__ == "__main__":
    # Small config: hidden_size=32, token_pooling='ent_idx' -> input_size_mult=2,
    # num_labels=4.
    hidden_size = 32
    input_size_mult = 2          # config.token_pooling == 'ent_idx'
    num_labels = 4
    d_in = input_size_mult * hidden_size

    key = jax.random.PRNGKey(0)
    k_feat, k_w1, k_b1, k_w2, k_b2 = jax.random.split(key, 5)

    w_dense = jax.random.normal(k_w1, (d_in, hidden_size), dtype=jnp.float32) * 0.02
    b_dense = jax.random.normal(k_b1, (hidden_size,), dtype=jnp.float32) * 0.02
    w_out = jax.random.normal(k_w2, (hidden_size, num_labels), dtype=jnp.float32) * 0.02
    b_out = jax.random.normal(k_b2, (num_labels,), dtype=jnp.float32) * 0.02

    # batch=8 -> single-tile grid; batch=20 -> 2-step grid with batch padding.
    for batch in (8, 20):
        feats = jax.random.normal(jax.random.fold_in(k_feat, batch),
                                  (batch, d_in), dtype=jnp.float32)
        logits, hidden = roberta_classification_head(
            feats, w_dense, b_dense, w_out, b_out)
        jax.block_until_ready((logits, hidden))

        # reference check in plain JAX
        h_ref = jnp.tanh(feats @ w_dense + b_dense)
        logits_ref = h_ref @ w_out + b_out
        assert logits.shape == (batch, num_labels), "logits shape mismatch"
        assert hidden.shape == (batch, hidden_size), "hidden shape mismatch"
        assert jnp.allclose(hidden, h_ref, atol=1e-5), "hidden mismatch"
        assert jnp.allclose(logits, logits_ref, atol=1e-5), "logits mismatch"

    print("KERNEL_OK")
</pallas_src>

<mosaic_0001>
module attributes {stable_mosaic.version = 11 : i64} {
  func.func @_cls_head_kernel(%arg0: i32, %arg1: memref<8x64xf32, #tpu.memory_space<vmem>>, %arg2: memref<64x32xf32, #tpu.memory_space<vmem>>, %arg3: memref<1x32xf32, #tpu.memory_space<vmem>>, %arg4: memref<32x128xf32, #tpu.memory_space<vmem>>, %arg5: memref<1x128xf32, #tpu.memory_space<vmem>>, %arg6: memref<8x128xf32, #tpu.memory_space<vmem>>, %arg7: memref<8x32xf32, #tpu.memory_space<vmem>>) attributes {dimension_semantics = [#tpu.dimension_semantics<parallel>], iteration_bounds = array<i64: 1>, scalar_prefetch = 0 : i64, scratch_operands = 0 : i64, tpu.core_type = #tpu.core_type<tc>, window_params = [{transform_indices = @transform_0, window_bounds = array<i64: 8, 64>}, {pipeline_mode = #tpu.pipeline_mode<synchronous>, transform_indices = @transform_1, window_bounds = array<i64: 64, 32>}, {pipeline_mode = #tpu.pipeline_mode<synchronous>, transform_indices = @transform_2, window_bounds = array<i64: 1, 32>}, {pipeline_mode = #tpu.pipeline_mode<synchronous>, transform_indices = @transform_3, window_bounds = array<i64: 32, 128>}, {pipeline_mode = #tpu.pipeline_mode<synchronous>, transform_indices = @transform_4, window_bounds = array<i64: 1, 128>}, {transform_indices = @transform_5, window_bounds = array<i64: 8, 128>}, {transform_indices = @transform_6, window_bounds = array<i64: 8, 32>}]} {
    %c0 = arith.constant 0 : index
    %c0_0 = arith.constant 0 : index
    %0 = vector.load %arg1[%c0, %c0_0] : memref<8x64xf32, #tpu.memory_space<vmem>>, vector<8x64xf32>
    %c0_1 = arith.constant 0 : index
    %c0_2 = arith.constant 0 : index
    %1 = vector.load %arg2[%c0_1, %c0_2] : memref<64x32xf32, #tpu.memory_space<vmem>>, vector<64x32xf32>
    %cst = arith.constant dense<0.000000e+00> : vector<8x32xf32>
    %2 = tpu.matmul %0, %1, %cst {dimension_numbers = #tpu.dot_dimension_numbers<[1], [0], [0], [1], [0, 0, 1, 1], [], []>} : vector<8x64xf32>, vector<64x32xf32>, vector<8x32xf32> -> vector<8x32xf32>
    %c0_3 = arith.constant 0 : index
    %c0_4 = arith.constant 0 : index
    %3 = vector.load %arg3[%c0_3, %c0_4] : memref<1x32xf32, #tpu.memory_space<vmem>>, vector<1x32xf32>
    %4 = vector.broadcast %3 : vector<1x32xf32> to vector<8x32xf32>
    %5 = arith.addf %2, %4 : vector<8x32xf32>
    %6 = math.tanh %5 : vector<8x32xf32>
    %c0_5 = arith.constant 0 : index
    %c0_6 = arith.constant 0 : index
    %7 = vector.load %arg7[%c0_5, %c0_6] : memref<8x32xf32, #tpu.memory_space<vmem>>, vector<8x32xf32>
    tpu.vector_store %arg7[%c0_5, %c0_6], %6 {strides = array<i32>} : memref<8x32xf32, #tpu.memory_space<vmem>>, vector<8x32xf32>,
    %c0_7 = arith.constant 0 : index
    %c0_8 = arith.constant 0 : index
    %8 = vector.load %arg4[%c0_7, %c0_8] : memref<32x128xf32, #tpu.memory_space<vmem>>, vector<32x128xf32>
    %cst_9 = arith.constant dense<0.000000e+00> : vector<8x128xf32>
    %9 = tpu.matmul %6, %8, %cst_9 {dimension_numbers = #tpu.dot_dimension_numbers<[1], [0], [0], [1], [0, 0, 1, 1], [], []>} : vector<8x32xf32>, vector<32x128xf32>, vector<8x128xf32> -> vector<8x128xf32>
    %c0_10 = arith.constant 0 : index
    %c0_11 = arith.constant 0 : index
    %10 = vector.load %arg5[%c0_10, %c0_11] : memref<1x128xf32, #tpu.memory_space<vmem>>, vector<1x128xf32>
    %11 = vector.broadcast %10 : vector<1x128xf32> to vector<8x128xf32>
    %12 = arith.addf %9, %11 : vector<8x128xf32>
    %c0_12 = arith.constant 0 : index
    %c0_13 = arith.constant 0 : index
    %13 = vector.load %arg6[%c0_12, %c0_13] : memref<8x128xf32, #tpu.memory_space<vmem>>, vector<8x128xf32>
    tpu.vector_store %arg6[%c0_12, %c0_13], %12 {strides = array<i32>} : memref<8x128xf32, #tpu.memory_space<vmem>>, vector<8x128xf32>,
    return
  }
  func.func @transform_0(%arg0: i32) -> (i32, i32) {
    %c0_i32 = arith.constant 0 : i32
    %c0_i32_0 = arith.constant 0 : i32
    return %arg0, %c0_i32 : i32, i32
  }
  func.func @transform_1(%arg0: i32) -> (i32, i32) {
    %c0_i32 = arith.constant 0 : i32
    %c0_i32_0 = arith.constant 0 : i32
    %c0_i32_1 = arith.constant 0 : i32
    return %c0_i32, %c0_i32_0 : i32, i32
  }
  func.func @transform_2(%arg0: i32) -> (i32, i32) {
    %c0_i32 = arith.constant 0 : i32
    %c0_i32_0 = arith.constant 0 : i32
    %c0_i32_1 = arith.constant 0 : i32
    return %c0_i32, %c0_i32_0 : i32, i32
  }
  func.func @transform_3(%arg0: i32) -> (i32, i32) {
    %c0_i32 = arith.constant 0 : i32
    %c0_i32_0 = arith.constant 0 : i32
    %c0_i32_1 = arith.constant 0 : i32
    return %c0_i32, %c0_i32_0 : i32, i32
  }
  func.func @transform_4(%arg0: i32) -> (i32, i32) {
    %c0_i32 = arith.constant 0 : i32
    %c0_i32_0 = arith.constant 0 : i32
    %c0_i32_1 = arith.constant 0 : i32
    return %c0_i32, %c0_i32_0 : i32, i32
  }
  func.func @transform_5(%arg0: i32) -> (i32, i32) {
    %c0_i32 = arith.constant 0 : i32
    %c0_i32_0 = arith.constant 0 : i32
    return %arg0, %c0_i32 : i32, i32
  }
  func.func @transform_6(%arg0: i32) -> (i32, i32) {
    %c0_i32 = arith.constant 0 : i32
    %c0_i32_0 = arith.constant 0 : i32
    return %arg0, %c0_i32 : i32, i32
  }
}

module attributes {stable_mosaic.version = 11 : i64} {
  func.func @_cls_head_kernel(%arg0: i32, %arg1: memref<8x64xf32, #tpu.memory_space<vmem>>, %arg2: memref<64x32xf32, #tpu.memory_space<vmem>>, %arg3: memref<1x32xf32, #tpu.memory_space<vmem>>, %arg4: memref<32x128xf32, #tpu.memory_space<vmem>>, %arg5: memref<1x128xf32, #tpu.memory_space<vmem>>, %arg6: memref<8x128xf32, #tpu.memory_space<vmem>>, %arg7: memref<8x32xf32, #tpu.memory_space<vmem>>) attributes {dimension_semantics = [#tpu.dimension_semantics<parallel>], iteration_bounds = array<i64: 1>, scalar_prefetch = 0 : i64, scratch_operands = 0 : i64, tpu.core_type = #tpu.core_type<tc>, window_params = [{transform_indices = @transform_0, window_bounds = array<i64: 8, 64>}, {pipeline_mode = #tpu.pipeline_mode<synchronous>, transform_indices = @transform_1, window_bounds = array<i64: 64, 32>}, {pipeline_mode = #tpu.pipeline_mode<synchronous>, transform_indices = @transform_2, window_bounds = array<i64: 1, 32>}, {pipeline_mode = #tpu.pipeline_mode<synchronous>, transform_indices = @transform_3, window_bounds = array<i64: 32, 128>}, {pipeline_mode = #tpu.pipeline_mode<synchronous>, transform_indices = @transform_4, window_bounds = array<i64: 1, 128>}, {transform_indices = @transform_5, window_bounds = array<i64: 8, 128>}, {transform_indices = @transform_6, window_bounds = array<i64: 8, 32>}]} {
    %c0 = arith.constant 0 : index
    %c0_0 = arith.constant 0 : index
    %0 = vector.load %arg1[%c0, %c0_0] : memref<8x64xf32, #tpu.memory_space<vmem>>, vector<8x64xf32>
    %c0_1 = arith.constant 0 : index
    %c0_2 = arith.constant 0 : index
    %1 = vector.load %arg2[%c0_1, %c0_2] : memref<64x32xf32, #tpu.memory_space<vmem>>, vector<64x32xf32>
    %cst = arith.constant dense<0.000000e+00> : vector<8x32xf32>
    %2 = tpu.matmul %0, %1, %cst {dimension_numbers = #tpu.dot_dimension_numbers<[1], [0], [0], [1], [0, 0, 1, 1], [], []>} : vector<8x64xf32>, vector<64x32xf32>, vector<8x32xf32> -> vector<8x32xf32>
    %c0_3 = arith.constant 0 : index
    %c0_4 = arith.constant 0 : index
    %3 = vector.load %arg3[%c0_3, %c0_4] : memref<1x32xf32, #tpu.memory_space<vmem>>, vector<1x32xf32>
    %4 = vector.broadcast %3 : vector<1x32xf32> to vector<8x32xf32>
    %5 = arith.addf %2, %4 : vector<8x32xf32>
    %6 = math.tanh %5 : vector<8x32xf32>
    %c0_5 = arith.constant 0 : index
    %c0_6 = arith.constant 0 : index
    %7 = vector.load %arg7[%c0_5, %c0_6] : memref<8x32xf32, #tpu.memory_space<vmem>>, vector<8x32xf32>
    tpu.vector_store %arg7[%c0_5, %c0_6], %6 {strides = array<i32>} : memref<8x32xf32, #tpu.memory_space<vmem>>, vector<8x32xf32>,
    %c0_7 = arith.constant 0 : index
    %c0_8 = arith.constant 0 : index
    %8 = vector.load %arg4[%c0_7, %c0_8] : memref<32x128xf32, #tpu.memory_space<vmem>>, vector<32x128xf32>
    %cst_9 = arith.constant dense<0.000000e+00> : vector<8x128xf32>
    %9 = tpu.matmul %6, %8, %cst_9 {dimension_numbers = #tpu.dot_dimension_numbers<[1], [0], [0], [1], [0, 0, 1, 1], [], []>} : vector<8x32xf32>, vector<32x128xf32>, vector<8x128xf32> -> vector<8x128xf32>
    %c0_10 = arith.constant 0 : index
    %c0_11 = arith.constant 0 : index
    %10 = vector.load %arg5[%c0_10, %c0_11] : memref<1x128xf32, #tpu.memory_space<vmem>>, vector<1x128xf32>
    %11 = vector.broadcast %10 : vector<1x128xf32> to vector<8x128xf32>
    %12 = arith.addf %9, %11 : vector<8x128xf32>
    %c0_12 = arith.constant 0 : index
    %c0_13 = arith.constant 0 : index
    %13 = vector.load %arg6[%c0_12, %c0_13] : memref<8x128xf32, #tpu.memory_space<vmem>>, vector<8x128xf32>
    tpu.vector_store %arg6[%c0_12, %c0_13], %12 {strides = array<i32>} : memref<8x128xf32, #tpu.memory_space<vmem>>, vector<8x128xf32>,
    return
  }
  func.func @transform_0(%arg0: i32) -> (i32, i32) {
    %c0_i32 = arith.constant 0 : i32
    %c0_i32_0 = arith.constant 0 : i32
    return %arg0, %c0_i32 : i32, i32
  }
  func.func @transform_1(%arg0: i32) -> (i32, i32) {
    %c0_i32 = arith.constant 0 : i32
    %c0_i32_0 = arith.constant 0 : i32
    %c0_i32_1 = arith.constant 0 : i32
    return %c0_i32, %c0_i32_0 : i32, i32
  }
  func.func @transform_2(%arg0: i32) -> (i32, i32) {
    %c0_i32 = arith.constant 0 : i32
    %c0_i32_0 = arith.constant 0 : i32
    %c0_i32_1 = arith.constant 0 : i32
    return %c0_i32, %c0_i32_0 : i32, i32
  }
  func.func @transform_3(%arg0: i32) -> (i32, i32) {
    %c0_i32 = arith.constant 0 : i32
    %c0_i32_0 = arith.constant 0 : i32
    %c0_i32_1 = arith.constant 0 : i32
    return %c0_i32, %c0_i32_0 : i32, i32
  }
  func.func @transform_4(%arg0: i32) -> (i32, i32) {
    %c0_i32 = arith.constant 0 : i32
    %c0_i32_0 = arith.constant 0 : i32
    %c0_i32_1 = arith.constant 0 : i32
    return %c0_i32, %c0_i32_0 : i32, i32
  }
  func.func @transform_5(%arg0: i32) -> (i32, i32) {
    %c0_i32 = arith.constant 0 : i32
    %c0_i32_0 = arith.constant 0 : i32
    return %arg0, %c0_i32 : i32, i32
  }
  func.func @transform_6(%arg0: i32) -> (i32, i32) {
    %c0_i32 = arith.constant 0 : i32
    %c0_i32_0 = arith.constant 0 : i32
    return %arg0, %c0_i32 : i32, i32
  }
}

</mosaic_0001>

<bundles_post_ra>
// kernel: tpu_custom_call.1
= control target key start
LH: loop header
LB: loop body
LE: loop exit
PB: predicated region body
PF: predicated region fallthrough
CT: control target
= control target key end

     0   :  { %12 = vsyncpa [#allocation3], 0  ;;  %v328_v1 = vmov 0.0   ;;  %vm329_vm0 = vmmov 0   ;;  %s418_s0 = inlined_call_operand.vmem [shape: f32[8,64], index: 0, kind: input, shape index: {}]   ;;  %s419_s1 = inlined_call_operand.vmem [shape: f32[64,32], index: 1, kind: input, shape index: {}]   ;;  %s420_s2 = inlined_call_operand.vmem [shape: f32[1,32], index: 2, kind: input, shape index: {}]   ;;  %s421_s3 = inlined_call_operand.vmem [shape: f32[32,128], index: 3, kind: input, shape index: {}]   ;;  %s422_s4 = inlined_call_operand.vmem [shape: f32[1,128], index: 4, kind: input, shape index: {}]   ;;  %s423_s5 = inlined_call_operand.hbm [shape: f32[8,128], index: 5, kind: output, shape index: {0}]   ;;  %s424_s6 = inlined_call_operand.hbm [shape: f32[8,32], index: 6, kind: output, shape index: {1}]  }
   0x1   :  { %v32_v0 = vld [vmem:[%s419_s1 + $0x38] sm:$0xff]  ;;  %248 = vmatprep.subr.mxu0 %v328_v1  ;;  %v31_v2 = vld [vmem:[%s419_s1 + $0x30] sm:$0xff]  ;;  %264 = vmatprep.mubr.msk.f32.mxu0 %vm329_vm0, %v328_v1  ;;  %v30_v3 = vld [vmem:[%s419_s1 + $0x28] sm:$0xff] }
   0x2   :  { %249 = vmatpush3.msra.mxu0 %v32_v0  ;;  %267 = vmatprep.subr.mxu1 %v328_v1 }
   0x3   :  { %250 = vmatprep.subr.mxu0 %v328_v1  ;;  %275 = vmatprep.mubr.msk.f32.mxu1 %vm329_vm0, %v328_v1 }
   0x4   :  { %13 = vsyncpa [#allocation5], 0  ;;  %251 = vmatpush3.msra.mxu0 %v31_v2  ;;  %v29_v4 = vld [vmem:[%s419_s1 + $0x20] sm:$0xff]  ;;  %v28_v5 = vld [vmem:[%s419_s1 + $0x18] sm:$0xff]  ;;  %vm40_vm1 = vcmask 523264   ;;  %vm115_vm2 = vcmask 261120  }
   0x5   :  { %252 = vmatprep.subr.mxu0 %v328_v1  ;;  %v27_v6 = vld [vmem:[%s419_s1 + $0x10] sm:$0xff]  ;;  %v26_v7 = vld [vmem:[%s419_s1 + $0x8] sm:$0xff]  ;;  %v25_v8 = vld [vmem:[%s419_s1] sm:$0xff]  ;;  %s330_s23 = smov [#allocation4]  }
   0x6   :  { %253 = vmatpush3.msra.mxu0 %v30_v3  ;;  %v24_v9 = vld [vmem:[%s418_s0] sm:$0xff]  ;;  %v120_v10 = vld [vmem:[%s421_s3 + $0x18] sm:$0xff]  ;;  %v119_v11 = vld [vmem:[%s421_s3 + $0x10] sm:$0xff]  ;;  %s218_s24 = sshll.u32 %s330_s23, 4  ;;  %s219_s24 = int_to_ptr.vmem [resolvable:$true] %s218_s24 }
   0x7   :  { %254 = vmatprep.subr.mxu0 %v328_v1  ;;  %268 = vmatpush3.msra.mxu1 %v120_v10  ;;  %v118_v12 = vld [vmem:[%s421_s3 + $0x8] sm:$0xff]  ;;  %v117_v13 = vld [vmem:[%s421_s3] sm:$0xff]  ;;  %s284_s25 = scalar_lea.vmem %s219_s24, 128  ;;  %p289_p1 = scmp.lt.s32.totalorder %s219_s24, %s219_s24 }
   0x8   :  { %255 = vmatpush3.msra.mxu0 %v29_v4  ;;  %269 = vmatprep.subr.mxu1 %v328_v1  ;;  %v230_v14 = vld [vmem:[%s420_s2] ss:$0 sm:$0xff]  ;;  %p285_p0 = scmp.ne.s32.totalorder %s219_s24, %s284_s25  ;;  %p290_p2 = scmp.lt.s32.totalorder %s284_s25, %s284_s25 }
   0x9   :  { %256 = vmatprep.subr.mxu0 %v328_v1  ;;  %270 = vmatpush3.msra.mxu1 %v119_v11 }
   0xa   :  { %257 = vmatpush3.msra.mxu0 %v28_v5  ;;  %271 = vmatprep.subr.mxu1 %v328_v1  ;;  %p291_p3 = por %p290_p2, %p289_p1 }
   0xb   :  { %258 = vmatprep.subr.mxu0 %v328_v1  ;;  %272 = vmatpush3.msra.mxu1 %v118_v12 }
   0xc   :  { %259 = vmatpush3.msra.mxu0 %v27_v6  ;;  %273 = vmatprep.subr.mxu1 %v328_v1  ;;  %p292_p4 = pnand %p291_p3, %p285_p0 }
   0xd   :  { %260 = vmatprep.subr.mxu0 %v328_v1  ;;  %274 = vmatpush3.msra.mxu1 %v117_v13 }
   0xe   :  { %261 = vmatpush3.msra.mxu0 %v26_v7 }
   0xf   :  { %262 = vmatprep.subr.mxu0 %v328_v1 }
  0x10   :  { %263 = vmatpush3.msra.mxu0 %v25_v8 }
  0x11   :  { %265 = vmatmul.mubr.msk.f32.vlgmr.msra.gmra.mxu0 %vm40_vm1, %v24_v9 }
  0xd1   :  { %v110_v15 = vpop.f32.mrf.mxu0 }
  0xd2   :  { %v111_v16 = vadd.f32 %v230_v14, %v110_v15 }
  0xd3   :  { %v266_v17 = vpop.f32.mrf.mxu0 }
  0xd4   :  { %282 = vtanh.f32 %v111_v16 }
  0xe1   :  { %v283_v18 = vpop.eup %282 }
  0xe2   :  { %276 = vmatmul.mubr.msk.f32.vlgmr.msra.gmra.mxu1 %vm115_vm2, %v283_v18  ;;  %116 = vst.msk [vmem:[#allocation4] sm:$0xff] %vm115_vm2, %v283_v18 }
  0xe3   :  { %295 = shalt.err (!%p292_p4)
}
  0xe4   :  { %221 = dma.vmem_to_hbm [thread:$0]  %s219_s24, 128, %s424_s6, [#allocation5]   ;;  %v232_v19 = vld [vmem:[%s422_s4] ss:$0 sm:$0xff] }
  0xe5   :  { %s331_s28 = smov [#allocation2]  }
  0xe6   :  { %s208_s29 = sshll.u32 %s331_s28, 4  ;;  %s209_s29 = int_to_ptr.vmem [resolvable:$true] %s208_s29 }
  0xe7   :  { %s304_s30 = scalar_lea.vmem %s209_s29, 128  ;;  %p309_p6 = scmp.lt.s32.totalorder %s209_s29, %s209_s29 }
  0xe8   :  { %p305_p5 = scmp.ne.s32.totalorder %s209_s29, %s304_s30  ;;  %p310_p7 = scmp.lt.s32.totalorder %s304_s30, %s304_s30 }
  0xea   :  { %p311_p8 = por %p310_p7, %p309_p6 }
  0xec   :  { %p312_p9 = pnand %p311_p8, %p305_p5 }
 0x1a2   :  { %v197_v20 = vpop.f32.mrf.mxu1 }
 0x1a3   :  { %v198_v21 = vadd.f32 %v232_v19, %v197_v20 }
 0x1a4   :  { %v277_v22 = vpop.f32.mrf.mxu1 }
 0x1a5   :  { %201 = vst [vmem:[#allocation2] sm:$0xff] %v198_v21 }
 0x1a6   :  { %315 = shalt.err (!%p312_p9)
}
 0x1a7   :  { %211 = dma.vmem_to_hbm [thread:$0]  %s209_s29, 128, %s423_s5, [#allocation3]  }
 0x1a8   :  { %324 = dma.done.wait [#allocation3], 128  }
 0x1a9   :  { %325 = vsyncadd [#allocation3], 4294967168 }
 0x1aa   :  { %326 = dma.done.wait [#allocation5], 128  }
 0x1ab   :  { %327 = vsyncadd [#allocation5], 4294967168 }
 0x1ac   :  { %228 = vsyncpa [#allocation3], 1 }
 0x1ad   :  { %229 = vsyncpa [#allocation5], 1 }

// kernel: tpu_custom_call.1
= control target key start
LH: loop header
LB: loop body
LE: loop exit
PB: predicated region body
PF: predicated region fallthrough
CT: control target
= control target key end

     0   :  { %12 = vsyncpa [#allocation3], 0  ;;  %v328_v1 = vmov 0.0   ;;  %vm329_vm0 = vmmov 0   ;;  %s418_s0 = inlined_call_operand.vmem [shape: f32[8,64], index: 0, kind: input, shape index: {}]   ;;  %s419_s1 = inlined_call_operand.vmem [shape: f32[64,32], index: 1, kind: input, shape index: {}]   ;;  %s420_s2 = inlined_call_operand.vmem [shape: f32[1,32], index: 2, kind: input, shape index: {}]   ;;  %s421_s3 = inlined_call_operand.vmem [shape: f32[32,128], index: 3, kind: input, shape index: {}]   ;;  %s422_s4 = inlined_call_operand.vmem [shape: f32[1,128], index: 4, kind: input, shape index: {}]   ;;  %s423_s5 = inlined_call_operand.hbm [shape: f32[8,128], index: 5, kind: output, shape index: {0}]   ;;  %s424_s6 = inlined_call_operand.hbm [shape: f32[8,32], index: 6, kind: output, shape index: {1}]  }
   0x1   :  { %v32_v0 = vld [vmem:[%s419_s1 + $0x38] sm:$0xff]  ;;  %248 = vmatprep.subr.mxu0 %v328_v1  ;;  %v31_v2 = vld [vmem:[%s419_s1 + $0x30] sm:$0xff]  ;;  %264 = vmatprep.mubr.msk.f32.mxu0 %vm329_vm0, %v328_v1  ;;  %v30_v3 = vld [vmem:[%s419_s1 + $0x28] sm:$0xff] }
   0x2   :  { %249 = vmatpush3.msra.mxu0 %v32_v0  ;;  %267 = vmatprep.subr.mxu1 %v328_v1 }
   0x3   :  { %250 = vmatprep.subr.mxu0 %v328_v1  ;;  %275 = vmatprep.mubr.msk.f32.mxu1 %vm329_vm0, %v328_v1 }
   0x4   :  { %13 = vsyncpa [#allocation5], 0  ;;  %251 = vmatpush3.msra.mxu0 %v31_v2  ;;  %v29_v4 = vld [vmem:[%s419_s1 + $0x20] sm:$0xff]  ;;  %v28_v5 = vld [vmem:[%s419_s1 + $0x18] sm:$0xff]  ;;  %vm40_vm1 = vcmask 523264   ;;  %vm115_vm2 = vcmask 261120  }
   0x5   :  { %252 = vmatprep.subr.mxu0 %v328_v1  ;;  %v27_v6 = vld [vmem:[%s419_s1 + $0x10] sm:$0xff]  ;;  %v26_v7 = vld [vmem:[%s419_s1 + $0x8] sm:$0xff]  ;;  %v25_v8 = vld [vmem:[%s419_s1] sm:$0xff]  ;;  %s330_s23 = smov [#allocation4]  }
   0x6   :  { %253 = vmatpush3.msra.mxu0 %v30_v3  ;;  %v24_v9 = vld [vmem:[%s418_s0] sm:$0xff]  ;;  %v120_v10 = vld [vmem:[%s421_s3 + $0x18] sm:$0xff]  ;;  %v119_v11 = vld [vmem:[%s421_s3 + $0x10] sm:$0xff]  ;;  %s218_s24 = sshll.u32 %s330_s23, 4  ;;  %s219_s24 = int_to_ptr.vmem [resolvable:$true] %s218_s24 }
   0x7   :  { %254 = vmatprep.subr.mxu0 %v328_v1  ;;  %268 = vmatpush3.msra.mxu1 %v120_v10  ;;  %v118_v12 = vld [vmem:[%s421_s3 + $0x8] sm:$0xff]  ;;  %v117_v13 = vld [vmem:[%s421_s3] sm:$0xff]  ;;  %s284_s25 = scalar_lea.vmem %s219_s24, 128  ;;  %p289_p1 = scmp.lt.s32.totalorder %s219_s24, %s219_s24 }
   0x8   :  { %255 = vmatpush3.msra.mxu0 %v29_v4  ;;  %269 = vmatprep.subr.mxu1 %v328_v1  ;;  %v230_v14 = vld [vmem:[%s420_s2] ss:$0 sm:$0xff]  ;;  %p285_p0 = scmp.ne.s32.totalorder %s219_s24, %s284_s25  ;;  %p290_p2 = scmp.lt.s32.totalorder %s284_s25, %s284_s25 }
   0x9   :  { %256 = vmatprep.subr.mxu0 %v328_v1  ;;  %270 = vmatpush3.msra.mxu1 %v119_v11 }
   0xa   :  { %257 = vmatpush3.msra.mxu0 %v28_v5  ;;  %271 = vmatprep.subr.mxu1 %v328_v1  ;;  %p291_p3 = por %p290_p2, %p289_p1 }
   0xb   :  { %258 = vmatprep.subr.mxu0 %v328_v1  ;;  %272 = vmatpush3.msra.mxu1 %v118_v12 }
   0xc   :  { %259 = vmatpush3.msra.mxu0 %v27_v6  ;;  %273 = vmatprep.subr.mxu1 %v328_v1  ;;  %p292_p4 = pnand %p291_p3, %p285_p0 }
   0xd   :  { %260 = vmatprep.subr.mxu0 %v328_v1  ;;  %274 = vmatpush3.msra.mxu1 %v117_v13 }
   0xe   :  { %261 = vmatpush3.msra.mxu0 %v26_v7 }
   0xf   :  { %262 = vmatprep.subr.mxu0 %v328_v1 }
  0x10   :  { %263 = vmatpush3.msra.mxu0 %v25_v8 }
  0x11   :  { %265 = vmatmul.mubr.msk.f32.vlgmr.msra.gmra.mxu0 %vm40_vm1, %v24_v9 }
  0xd1   :  { %v110_v15 = vpop.f32.mrf.mxu0 }
  0xd2   :  { %v111_v16 = vadd.f32 %v230_v14, %v110_v15 }
  0xd3   :  { %v266_v17 = vpop.f32.mrf.mxu0 }
  0xd4   :  { %282 = vtanh.f32 %v111_v16 }
  0xe1   :  { %v283_v18 = vpop.eup %282 }
  0xe2   :  { %276 = vmatmul.mubr.msk.f32.vlgmr.msra.gmra.mxu1 %vm115_vm2, %v283_v18  ;;  %116 = vst.msk [vmem:[#allocation4] sm:$0xff] %vm115_vm2, %v283_v18 }
  0xe3   :  { %295 = shalt.err (!%p292_p4)
}
  0xe4   :  { %221 = dma.vmem_to_hbm [thread:$0]  %s219_s24, 128, %s424_s6, [#allocation5]   ;;  %v232_v19 = vld [vmem:[%s422_s4] ss:$0 sm:$0xff] }
  0xe5   :  { %s331_s28 = smov [#allocation2]  }
  0xe6   :  { %s208_s29 = sshll.u32 %s331_s28, 4  ;;  %s209_s29 = int_to_ptr.vmem [resolvable:$true] %s208_s29 }
  0xe7   :  { %s304_s30 = scalar_lea.vmem %s209_s29, 128  ;;  %p309_p6 = scmp.lt.s32.totalorder %s209_s29, %s209_s29 }
  0xe8   :  { %p305_p5 = scmp.ne.s32.totalorder %s209_s29, %s304_s30  ;;  %p310_p7 = scmp.lt.s32.totalorder %s304_s30, %s304_s30 }
  0xea   :  { %p311_p8 = por %p310_p7, %p309_p6 }
  0xec   :  { %p312_p9 = pnand %p311_p8, %p305_p5 }
 0x1a2   :  { %v197_v20 = vpop.f32.mrf.mxu1 }
 0x1a3   :  { %v198_v21 = vadd.f32 %v232_v19, %v197_v20 }
 0x1a4   :  { %v277_v22 = vpop.f32.mrf.mxu1 }
 0x1a5   :  { %201 = vst [vmem:[#allocation2] sm:$0xff] %v198_v21 }
 0x1a6   :  { %315 = shalt.err (!%p312_p9)
}
 0x1a7   :  { %211 = dma.vmem_to_hbm [thread:$0]  %s209_s29, 128, %s423_s5, [#allocation3]  }
 0x1a8   :  { %324 = dma.done.wait [#allocation3], 128  }
 0x1a9   :  { %325 = vsyncadd [#allocation3], 4294967168 }
 0x1aa   :  { %326 = dma.done.wait [#allocation5], 128  }
 0x1ab   :  { %327 = vsyncadd [#allocation5], 4294967168 }
 0x1ac   :  { %228 = vsyncpa [#allocation3], 1 }
 0x1ad   :  { %229 = vsyncpa [#allocation5], 1 }

</bundles_post_ra>
